<compile_context>
chip_gen: v7x
topology: tpu7x:2x2x1
jax: 0.10.0
libtpu: 0.0.40
codegen_flags: <defaults>
</compile_context>

<pallas_src>
import math

import jax
import jax.numpy as jnp
from jax.experimental import pallas as pl
from jax.experimental.pallas import tpu as pltpu

_EPS = 1e-12                              # torch.nn.functional.normalize default
_TARGET_BLOCK_BYTES = 2 * 1024 * 1024     # ~2 MiB/block -> ~8 MiB pipelined VMEM
_MIN_GRID_STEPS = 8                       # aim for >=8 steps (always >=2 for v7x)


# ---------------------------------------------------------------------------
# Kernels
# ---------------------------------------------------------------------------
def _unit_norm_lane_kernel(x_ref, o_ref):
    """Normalized dim on the lane (last) axis: block (tile_m, D)."""
    x = x_ref[...].astype(jnp.float32)
    ss = jnp.sum(x * x, axis=-1, keepdims=True)          # XLU lane reduction
    inv = jax.lax.rsqrt(jnp.maximum(ss, _EPS * _EPS))     # == 1/max(||x||, eps)
    o_ref[...] = (x * inv).astype(o_ref.dtype)


def _unit_norm_sublane_kernel(x_ref, o_ref):
    """Normalized dim on the sublane axis: block (tile_n, C, tile_hw)."""
    x = x_ref[...].astype(jnp.float32)
    ss = jnp.sum(x * x, axis=1, keepdims=True)            # reduce over C
    inv = jax.lax.rsqrt(jnp.maximum(ss, _EPS * _EPS))
    o_ref[...] = (x * inv).astype(o_ref.dtype)


# ---------------------------------------------------------------------------
# Block-size heuristics
# ---------------------------------------------------------------------------
def _pick_block_rows(M, row_bytes, sub):
    """Rows per block along a leading / sublane axis.

    Sized by bytes (~2 MiB), rounded to `sub` (packed-sublane multiple, or 1
    for an unconstrained leading axis), and capped so the grid has >= 2 steps
    (ideally >= _MIN_GRID_STEPS) whenever M can legally be split.
    """
    tile = max(sub, (_TARGET_BLOCK_BYTES // max(1, row_bytes)) // sub * sub)
    max_steps = M // sub
    if max_steps >= 2:
        steps = min(_MIN_GRID_STEPS, max_steps)
        per_step = -(-M // steps)                         # cdiv
        per_step = max(sub, -(-per_step // sub) * sub)    # round up to sub
        tile = min(tile, per_step)
    return max(1, min(tile, M))                           # tile == M is always legal


def _pick_block_lanes(HW, col_bytes, want_split):
    """Lane-axis tile: a multiple of 128 (lane-dense) or the full axis."""
    if HW <= 128:
        return HW
    tile = max(128, (_TARGET_BLOCK_BYTES // max(1, col_bytes)) // 128 * 128)
    if want_split and HW >= 256:
        # Leading grid axis has a single step: split lanes so both v7x TCs work.
        tile = min(tile, max(128, (HW // 2) // 128 * 128))
    if tile >= HW:
        return HW
    return tile


# ---------------------------------------------------------------------------
# Wrapper (forward pass)
# ---------------------------------------------------------------------------
def unit_norm(x, dim=1):
    """torch.nn.functional.normalize(x, p=2, dim=dim, eps=1e-12) on TPU."""
    dim = dim % x.ndim
    lead = x.shape[:dim]
    C = x.shape[dim]
    trail = x.shape[dim + 1:]
    N = math.prod(lead) if lead else 1
    HW = math.prod(trail) if trail else 1
    itemsize = jnp.dtype(x.dtype).itemsize
    sub = max(8, 32 // itemsize)          # 8 for f32, 16 for bf16, 32 for int8/fp8

    if HW == 1:
        # Normalized dim is (effectively) the last axis: lane-reduce path.
        x2d = x.reshape(N, C)             # contiguous reshape, free
        tile_m = _pick_block_rows(N, C * itemsize, sub)
        out = pl.pallas_call(
            _unit_norm_lane_kernel,
            out_shape=jax.ShapeDtypeStruct((N, C), x.dtype),
            grid=(pl.cdiv(N, tile_m),),   # ragged edge block masked by Pallas
            in_specs=[pl.BlockSpec((tile_m, C), lambda i: (i, 0))],
            out_specs=pl.BlockSpec((tile_m, C), lambda i: (i, 0)),
            compiler_params=pltpu.CompilerParams(
                dimension_semantics=("parallel",)),
        )(x2d)
        return out.reshape(x.shape)

    # Normalized dim has trailing axes (e.g. NCHW, dim=1): keep H*W on the lane
    # axis (no transpose, lane-dense stores) and reduce over C on sublanes.
    x3d = x.reshape(N, C, HW)             # contiguous reshape, free
    tile_hw = _pick_block_lanes(HW, C * itemsize, want_split=(N < 2))
    if tile_hw == HW:
        # Whole lane axis fits in one block: batch leading rows for block bytes.
        tile_n = _pick_block_rows(N, C * HW * itemsize, 1)
    else:
        tile_n = 1
    out = pl.pallas_call(
        _unit_norm_sublane_kernel,
        out_shape=jax.ShapeDtypeStruct((N, C, HW), x.dtype),
        grid=(pl.cdiv(N, tile_n), pl.cdiv(HW, tile_hw)),
        in_specs=[pl.BlockSpec((tile_n, C, tile_hw), lambda n, j: (n, 0, j))],
        out_specs=pl.BlockSpec((tile_n, C, tile_hw), lambda n, j: (n, 0, j)),
        compiler_params=pltpu.CompilerParams(
            dimension_semantics=("parallel", "parallel")),
    )(x3d)
    return out.reshape(x.shape)


class UnitNormLayer:
    """Drop-in mirror of the PyTorch module's forward."""

    def __call__(self, x):
        return unit_norm(x, dim=1)


# ---------------------------------------------------------------------------
# Reference + demo
# ---------------------------------------------------------------------------
def _reference(x, dim=1):
    """Pure-JAX mirror of torch.nn.functional.normalize(x, p=2, dim, eps=1e-12)."""
    xf = x.astype(jnp.float32)
    norm = jnp.sqrt(jnp.sum(xf * xf, axis=dim, keepdims=True))
    return (xf / jnp.maximum(norm, _EPS)).astype(jnp.float32)


if __name__ == "__main__":
    key = jax.random.PRNGKey(0)
    k1, k2, k3, k4 = jax.random.split(key, 4)
    layer = UnitNormLayer()

    # 1) Small 2-D (batch, hidden): dim=1 is the lane axis (lane-reduce path).
    x2d = jax.random.normal(k1, (8, 32), dtype=jnp.float32)
    o2d = jax.block_until_ready(layer(x2d))
    assert o2d.shape == x2d.shape
    assert jnp.allclose(o2d, _reference(x2d, 1), atol=1e-5, rtol=1e-5), "2-D mismatch"

    # 2) Ragged row count (20 % 16 != 0): cdiv grid, edge block masked, no pad/slice.
    x2r = jax.random.normal(k2, (20, 32), dtype=jnp.float32)
    o2r = jax.block_until_ready(layer(x2r))
    assert o2r.shape == x2r.shape
    assert jnp.allclose(o2r, _reference(x2r, 1), atol=1e-5, rtol=1e-5), "ragged mismatch"

    # 3) NCHW feature map, normalized over channels (dim=1): sublane-reduce path,
    #    H*W stays lane-dense, no transpose.
    x4d = jax.random.normal(k3, (2, 4, 16, 16), dtype=jnp.float32)
    o4d = jax.block_until_ready(layer(x4d))
    assert o4d.shape == x4d.shape
    assert jnp.allclose(o4d, _reference(x4d, 1), atol=1e-5, rtol=1e-5), "4-D mismatch"

    # 4) bf16 input streamed in native dtype, normalized in f32 inside the kernel.
    xbf = jax.random.normal(k4, (4, 32), dtype=jnp.bfloat16)
    obf = jax.block_until_ready(layer(xbf))
    assert obf.shape == xbf.shape and obf.dtype == jnp.bfloat16
    assert jnp.allclose(obf.astype(jnp.float32), _reference(xbf, 1),
                        atol=2e-2, rtol=2e-2), "bf16 mismatch"

    print("KERNEL_OK")
</pallas_src>

<mosaic_0001>
module attributes {stable_mosaic.version = 11 : i64} {
  func.func @_unit_norm_lane_kernel(%arg0: i32, %arg1: memref<8x32xf32, #tpu.memory_space<vmem>>, %arg2: memref<8x32xf32, #tpu.memory_space<vmem>>) attributes {dimension_semantics = [#tpu.dimension_semantics<parallel>], iteration_bounds = array<i64: 1>, scalar_prefetch = 0 : i64, scratch_operands = 0 : i64, tpu.core_type = #tpu.core_type<tc>, window_params = [{transform_indices = @transform_0, window_bounds = array<i64: 8, 32>}, {transform_indices = @transform_1, window_bounds = array<i64: 8, 32>}]} {
    %c0 = arith.constant 0 : index
    %c0_0 = arith.constant 0 : index
    %0 = vector.load %arg1[%c0, %c0_0] : memref<8x32xf32, #tpu.memory_space<vmem>>, vector<8x32xf32>
    %1 = arith.mulf %0, %0 : vector<8x32xf32>
    %cst = arith.constant dense<0.000000e+00> : vector<8xf32>
    %2 = vector.multi_reduction <add>, %1, %cst [1] : vector<8x32xf32> to vector<8xf32>
    %3 = vector.shape_cast %2 : vector<8xf32> to vector<8x1xf32>
    %cst_1 = arith.constant 1.000000e-24 : f32
    %4 = vector.broadcast %cst_1 : f32 to vector<8x1xf32>
    %5 = arith.maximumf %3, %4 : vector<8x1xf32>
    %6 = math.rsqrt %5 : vector<8x1xf32>
    %7 = vector.broadcast %6 : vector<8x1xf32> to vector<8x32xf32>
    %8 = arith.mulf %0, %7 : vector<8x32xf32>
    %c0_2 = arith.constant 0 : index
    %c0_3 = arith.constant 0 : index
    %9 = vector.load %arg2[%c0_2, %c0_3] : memref<8x32xf32, #tpu.memory_space<vmem>>, vector<8x32xf32>
    tpu.vector_store %arg2[%c0_2, %c0_3], %8 {strides = array<i32>} : memref<8x32xf32, #tpu.memory_space<vmem>>, vector<8x32xf32>,
    return
  }
  func.func @transform_0(%arg0: i32) -> (i32, i32) {
    %c0_i32 = arith.constant 0 : i32
    %c0_i32_0 = arith.constant 0 : i32
    return %arg0, %c0_i32 : i32, i32
  }
  func.func @transform_1(%arg0: i32) -> (i32, i32) {
    %c0_i32 = arith.constant 0 : i32
    %c0_i32_0 = arith.constant 0 : i32
    return %arg0, %c0_i32 : i32, i32
  }
}

</mosaic_0001>

<bundles_post_ra>
// kernel: tpu_custom_call.1
= control target key start
LH: loop header
LB: loop body
LE: loop exit
PB: predicated region body
PF: predicated region fallthrough
CT: control target
= control target key end

     0   :  { %6 = vsyncpa [#allocation3], 0  ;;  %s134_s0 = inlined_call_operand.hbm [shape: f32[8,32], index: 0, kind: input, shape index: {}]   ;;  %s135_s1 = inlined_call_operand.hbm [shape: f32[8,32], index: 1, kind: output, shape index: {}]  }
   0x1   :  { %7 = vsyncpa [#allocation4], 0  ;;  %s98_s6 = smov [#allocation2]   ;;  %s50_s10 = scalar_lea.hbm %s134_s0, 128 }
   0x2   :  { %s14_s7 = sshll.u32 %s98_s6, 4  ;;  %p51_p0 = scmp.ne.s32.totalorder %s134_s0, %s50_s10  ;;  %s15_s7 = int_to_ptr.vmem [resolvable:$true] %s14_s7 }
   0x3   :  { %p54_p1 = scmp.lt.u32.totalorder %s50_s10, %s134_s0 }
   0x5   :  { %p56_p2 = pnand %p54_p1, %p51_p0 }
   0x7   :  { %59 = shalt.err (!%p56_p2)
}
   0x8   :  { %s60_s15 = scalar_lea.vmem %s15_s7, 128  ;;  %p65_p4 = scmp.lt.s32.totalorder %s15_s7, %s15_s7 }
   0x9   :  { %p61_p3 = scmp.ne.s32.totalorder %s15_s7, %s60_s15  ;;  %p66_p5 = scmp.lt.s32.totalorder %s60_s15, %s60_s15 }
   0xb   :  { %p67_p6 = por %p66_p5, %p65_p4 }
   0xd   :  { %p68_p7 = pnand %p67_p6, %p61_p3 }
   0xf   :  { %71 = shalt.err (!%p68_p7)
}
  0x10   :  { %17 = dma.hbm_to_vmem [thread:$0]  %s134_s0, 128, %s15_s7, [#allocation3]  }
  0x11   :  { %94 = dma.done.wait [#allocation3], 128  }
  0x12   :  { %95 = vsyncadd [#allocation3], 4294967168  ;;  %v21_v0 = vld [vmem:[#allocation2] sm:$0xff]  ;;  %vm23_vm0 = vcmask 261120   ;;  %s99_s18 = smov [#allocation5]  }
  0x13   :  { %v22_v1 = vmul.f32 %v21_v0, %v21_v0  ;;  %s37_s19 = sshll.u32 %s99_s18, 4  ;;  %s38_s19 = int_to_ptr.vmem [resolvable:$true] %s37_s19 }
  0x14   :  { %s72_s20 = scalar_lea.vmem %s38_s19, 128  ;;  %p77_p9 = scmp.lt.s32.totalorder %s38_s19, %s38_s19 }
  0x15   :  { %v24_v2 = vsel %vm23_vm0, %v22_v1, 0.0  ;;  %p73_p8 = scmp.ne.s32.totalorder %s38_s19, %s72_s20  ;;  %p78_p10 = scmp.lt.s32.totalorder %s72_s20, %s72_s20 }
  0x16   :  { %25 = vadd.xlane.f32.xlu0 %v24_v2 }
  0x17   :  { %p79_p11 = por %p78_p10, %p77_p9 }
  0x19   :  { %p80_p12 = pnand %p79_p11, %p73_p8 }
  0xa3   :  { %v26_v3 = vpop.xlane.xlu0 %25 }
  0xa4   :  { %v27_v4 = vmax.f32 %v26_v3, 1e-24 }
  0xa6   :  { %48 = vrsqrt.f32 %v27_v4 }
  0xb0   :  { %v49_v5 = vpop.eup %48 }
  0xb1   :  { %v29_v6 = vmul.f32 %v49_v5, %v21_v0 }
  0xb3   :  { %30 = vst.msk [vmem:[#allocation5] sm:$0xff] %vm23_vm0, %v29_v6 }
  0xb4   :  { %83 = shalt.err (!%p80_p12)
}
  0xb5   :  { %s84_s22 = scalar_lea.hbm %s135_s1, 128 }
  0xb6   :  { %p85_p13 = scmp.ne.s32.totalorder %s135_s1, %s84_s22  ;;  %p88_p0 = scmp.lt.u32.totalorder %s84_s22, %s135_s1 }
  0xb8   :  { %p90_p1 = pnand %p88_p0, %p85_p13 }
  0xba   :  { %93 = shalt.err (!%p90_p1)
}
  0xbb   :  { %40 = dma.vmem_to_hbm [thread:$0]  %s38_s19, 128, %s135_s1, [#allocation4]  }
  0xbc   :  { %96 = dma.done.wait [#allocation4], 128  }
  0xbd   :  { %97 = vsyncadd [#allocation4], 4294967168 }
  0xbe   :  { %44 = vsyncpa [#allocation3], 1 }
  0xbf   :  { %45 = vsyncpa [#allocation4], 1 }

</bundles_post_ra>
